<compile_context>
chip_gen: v6e
topology: v6e:2x2x1
jax: 0.10.0
libtpu: 0.0.40
codegen_flags: <defaults>
</compile_context>

<pallas_src>
import functools

import jax
import jax.numpy as jnp
from jax.experimental import pallas as pl
from jax.experimental.pallas import tpu as pltpu

_LANE = 128
_SUBLANE = 8


def _round_up(x, m):
    return ((x + m - 1) // m) * m


def _gauss_decoder_kernel(
    z_ref,
    w1_ref, b1_ref,      # packed (Wh1|Wg1), (bh1|bg1)      -> (Lp, 2*H2p)
    w2_ref, b2_ref,      # packed (Wh2|Wg2), (bh2|bg2)      -> (H2p, 2*H1p)
    wh_ref, bh_ref,      # packed (Wmu|0.5*Wlv), (bmu|0.5*blv) -> (H1p, 2*Np)
    out_ref,             # packed (mu|std)                   -> (tile, 2*Np)
    *, h2, h1, n,
):
    # Cast matmul LHS to the weight dtype (no-op for f32, enables bf16 MXU path).
    z = z_ref[...].astype(w1_ref.dtype)

    # --- GatedDense 1 (fused): one (Lp, 2*H2p) matmul, lane-aligned split ---
    r1 = jnp.dot(z, w1_ref[...], preferred_element_type=jnp.float32) + b1_ref[...]
    a1 = (r1[:, :h2] * jax.nn.sigmoid(r1[:, h2:])).astype(w2_ref.dtype)  # f32 VPU/EUP

    # --- GatedDense 2 (fused): one (H2p, 2*H1p) matmul ---
    r2 = jnp.dot(a1, w2_ref[...], preferred_element_type=jnp.float32) + b2_ref[...]
    a2 = (r2[:, :h1] * jax.nn.sigmoid(r2[:, h1:])).astype(wh_ref.dtype)

    # --- mu / log_var heads (fused): one (H1p, 2*Np) matmul ---
    r3 = jnp.dot(a2, wh_ref[...], preferred_element_type=jnp.float32) + bh_ref[...]

    # Two direct lane-aligned sub-slice stores into the packed (mu|std) output
    # (no concatenate -> no extra (tile, 2N) VMEM/vreg copy).
    # 0.5 is folded into the packed log_var weights/bias, so the hardtanh bounds
    # become (-3, 1):  exp(clip(0.5*x, -3, 1)) == exp(0.5*clip(x, -6, 2)).
    out_ref[:, :n] = r3[:, :n]
    out_ref[:, n:] = jnp.exp(jnp.clip(r3[:, n:], -3.0, 1.0))


def _const_spec(arr):
    """BlockSpec for a weight resident across the whole grid.

    Constant index_map => never re-DMA'd; Buffered(1) avoids allocating a
    useless second VMEM buffer for it."""
    idx = lambda i: (0, 0)
    try:
        return pl.BlockSpec(arr.shape, idx, pipeline_mode=pl.Buffered(1))
    except TypeError:  # older BlockSpec without pipeline_mode kwarg
        return pl.BlockSpec(arr.shape, idx)


def _vmem_cap_bytes():
    """Physical per-core VMEM minus headroom for compiler scratch/semaphores."""
    try:
        phys = int(pltpu.get_tpu_info().vmem_capacity_bytes)
    except Exception:
        phys = 64 << 20  # conservative: v7x per-TC physical VMEM
    # v7x (64 MiB): cap ~48 MiB.  v5e/v6e (128 MiB): allow up to ~100 MiB.
    return int(min(max(phys - (16 << 20), 32 << 20), 100 << 20))


def two_layer_gauss_decoder(z, packed, *, n_dims=None, tb=512):
    """z: (B, latent_dims) f32, packed params from pack_params -> (mu, std).

    n_dims: true (unpadded) output feature count; defaults to the padded width.
    """
    B, L = z.shape
    w1, b1 = packed["w1"], packed["b1"]
    w2, b2 = packed["w2"], packed["b2"]
    wh, bh = packed["wh"], packed["bh"]
    Lp = w1.shape[0]
    H2p = w1.shape[1] // 2
    H1p = w2.shape[1] // 2
    Np = wh.shape[1] // 2
    N = Np if n_dims is None else int(n_dims)
    assert L <= Lp and N <= Np, "z / n_dims inconsistent with packed params"
    assert (Lp % _LANE == 0 and H2p % _LANE == 0 and H1p % _LANE == 0
            and Np % _LANE == 0), "pack_params must pad dims to multiples of 128"

    # --- batch tiling --------------------------------------------------------
    if B <= tb:
        if B >= 256:
            # Guarantee >= 2 grid steps so ("parallel",) shards the batch over
            # both v7x TensorCores instead of leaving one idle.
            tile = max(_SUBLANE, _round_up(pl.cdiv(B, 2), _SUBLANE))
        else:
            tile = max(_SUBLANE, _round_up(B, _SUBLANE))  # single step, no overhead
    else:
        tile = tb
    Bp = _round_up(B, tile)
    if Bp != B or Lp != L:
        z = jnp.pad(z, ((0, Bp - B), (0, Lp - L)))  # zero pad: exact
    grid = (Bp // tile,)

    # --- VMEM budget (weights single-buffered, z/out double-buffered) --------
    def nbytes(a):
        return int(a.size) * a.dtype.itemsize

    weight_bytes = sum(nbytes(a) for a in (w1, b1, w2, b2, wh, bh))
    io_bytes = 2 * (tile * Lp * 4) + 2 * (tile * 2 * Np * 4)
    vmem_limit = int(min(max(weight_bytes + io_bytes + (8 << 20), 32 << 20),
                         _vmem_cap_bytes()))

    # --- XLA scheduling hint --------------------------------------------------
    flops = 2 * Bp * (Lp * 2 * H2p + H2p * 2 * H1p + H1p * 2 * Np)
    transcendentals = Bp * (2 * H2p + 2 * H1p + Np)  # sigmoid ~ exp+recip, plus exp
    bytes_accessed = Bp * Lp * 4 + weight_bytes + Bp * 2 * Np * 4

    kernel = functools.partial(_gauss_decoder_kernel, h2=H2p, h1=H1p, n=Np)
    out = pl.pallas_call(
        kernel,
        out_shape=jax.ShapeDtypeStruct((Bp, 2 * Np), jnp.float32),
        grid=grid,
        in_specs=[
            pl.BlockSpec((tile, Lp), lambda i: (i, 0)),     # z (batch-tiled)
            _const_spec(w1), _const_spec(b1),
            _const_spec(w2), _const_spec(b2),
            _const_spec(wh), _const_spec(bh),
        ],
        out_specs=pl.BlockSpec((tile, 2 * Np), lambda i: (i, 0)),
        compiler_params=pltpu.CompilerParams(
            dimension_semantics=("parallel",),   # batch axis -> megacore on v7x
            vmem_limit_bytes=vmem_limit,
        ),
        cost_estimate=pl.CostEstimate(
            flops=flops,
            transcendentals=transcendentals,
            bytes_accessed=bytes_accessed,
        ),
    )(z, w1, b1, w2, b2, wh, bh)

    mu = out[:B, :N]
    std = out[:B, Np:Np + N]
    return mu, std


def pack_params(p, *, weights_dtype=jnp.float32):
    """Fuse gate/head weight pairs, fold the 0.5 log-std factor, and zero-pad
    every feature dimension to a multiple of 128 so all in-kernel lane slices,
    matmuls and stores are unmasked / lane-dense.  Zero padding is exact.

    weights_dtype=jnp.bfloat16 is recommended on ALL TPU generations (v5e
    included: its MXU is natively bf16 and weight DMA/VMEM halves); the
    kernel keeps sigmoid/mul/exp in f32 either way.  In bf16 mode loosen
    correctness tolerance to ~1e-2 and verify std (not just mu): the folded
    0.5*Wlv rounding error is exponentiated."""
    L, H2 = p["wh1"].shape
    H1 = p["wh2"].shape[1]
    N = p["wmu"].shape[1]
    Lp, H2p, H1p, Np = (_round_up(d, _LANE) for d in (L, H2, H1, N))

    def pad(a, rows, cols):
        return jnp.pad(a, ((0, rows - a.shape[0]), (0, cols - a.shape[1])))

    w1 = jnp.concatenate([pad(p["wh1"], Lp, H2p), pad(p["wg1"], Lp, H2p)], axis=1)
    b1 = jnp.concatenate([pad(p["bh1"], 1, H2p), pad(p["bg1"], 1, H2p)], axis=1)
    w2 = jnp.concatenate([pad(p["wh2"], H2p, H1p), pad(p["wg2"], H2p, H1p)], axis=1)
    b2 = jnp.concatenate([pad(p["bh2"], 1, H1p), pad(p["bg2"], 1, H1p)], axis=1)
    wh = jnp.concatenate([pad(p["wmu"], H1p, Np), 0.5 * pad(p["wlv"], H1p, Np)], axis=1)
    bh = jnp.concatenate([pad(p["bmu"], 1, Np), 0.5 * pad(p["blv"], 1, Np)], axis=1)
    return dict(
        w1=w1.astype(weights_dtype), b1=b1.astype(jnp.float32),
        w2=w2.astype(weights_dtype), b2=b2.astype(jnp.float32),
        wh=wh.astype(weights_dtype), bh=bh.astype(jnp.float32),
    )


def init_params(key, latent_dims, h_dim_1, h_dim_2, n_dims):
    """PyTorch-Linear-style init U(-1/sqrt(fan_in), 1/sqrt(fan_in)).
    Weights stored as (in_features, out_features)."""
    def linear(k, fan_in, fan_out):
        kw, kb = jax.random.split(k)
        bound = 1.0 / jnp.sqrt(float(fan_in))
        w = jax.random.uniform(kw, (fan_in, fan_out), jnp.float32, -bound, bound)
        b = jax.random.uniform(kb, (1, fan_out), jnp.float32, -bound, bound)
        return w, b

    keys = jax.random.split(key, 6)
    wh1, bh1 = linear(keys[0], latent_dims, h_dim_2)
    wg1, bg1 = linear(keys[1], latent_dims, h_dim_2)
    wh2, bh2 = linear(keys[2], h_dim_2, h_dim_1)
    wg2, bg2 = linear(keys[3], h_dim_2, h_dim_1)
    wmu, bmu = linear(keys[4], h_dim_1, n_dims)
    wlv, blv = linear(keys[5], h_dim_1, n_dims)
    return dict(
        wh1=wh1, bh1=bh1, wg1=wg1, bg1=bg1,
        wh2=wh2, bh2=bh2, wg2=wg2, bg2=bg2,
        wmu=wmu, bmu=bmu, wlv=wlv, blv=blv,
    )


def reference_forward(z, p):
    """Pure-JAX reference (unpacked, unpadded params) for correctness checking."""
    a1 = (z @ p["wh1"] + p["bh1"]) * jax.nn.sigmoid(z @ p["wg1"] + p["bg1"])
    a2 = (a1 @ p["wh2"] + p["bh2"]) * jax.nn.sigmoid(a1 @ p["wg2"] + p["bg2"])
    mu = a2 @ p["wmu"] + p["bmu"]
    lv = jnp.clip(a2 @ p["wlv"] + p["blv"], -6.0, 2.0)
    return mu, jnp.exp(0.5 * lv)


if __name__ == "__main__":
    # Small shapes consistent with the module; deliberately NOT lane-multiples
    # so the padding path (latent/hidden/output -> multiples of 128) is exercised.
    B, LATENT, H1, H2, N_DIMS = 16, 40, 100, 120, 200

    key = jax.random.PRNGKey(0)
    kz, kp = jax.random.split(key)
    z = jax.random.normal(kz, (B, LATENT), dtype=jnp.float32)
    raw_params = init_params(kp, LATENT, H1, H2, N_DIMS)
    packed = pack_params(raw_params)  # f32 weights -> exact vs. reference

    fwd = jax.jit(functools.partial(two_layer_gauss_decoder, n_dims=N_DIMS, tb=512))
    mu, std = fwd(z, packed)
    jax.block_until_ready((mu, std))

    mu_ref, std_ref = reference_forward(z, raw_params)
    assert mu.shape == (B, N_DIMS) and std.shape == (B, N_DIMS)
    assert jnp.allclose(mu, mu_ref, atol=1e-4, rtol=1e-4)
    assert jnp.allclose(std, std_ref, atol=1e-4, rtol=1e-4)

    print("KERNEL_OK")
</pallas_src>

<mosaic_0001>
module attributes {stable_mosaic.version = 11 : i64} {
  func.func @_gauss_decoder_kernel(%arg0: i32, %arg1: memref<16x128xf32, #tpu.memory_space<vmem>>, %arg2: memref<128x256xf32, #tpu.memory_space<vmem>>, %arg3: memref<1x256xf32, #tpu.memory_space<vmem>>, %arg4: memref<128x256xf32, #tpu.memory_space<vmem>>, %arg5: memref<1x256xf32, #tpu.memory_space<vmem>>, %arg6: memref<128x512xf32, #tpu.memory_space<vmem>>, %arg7: memref<1x512xf32, #tpu.memory_space<vmem>>, %arg8: memref<16x512xf32, #tpu.memory_space<vmem>>) attributes {dimension_semantics = [#tpu.dimension_semantics<parallel>], iteration_bounds = array<i64: 1>, scalar_prefetch = 0 : i64, scratch_operands = 0 : i64, tpu.core_type = #tpu.core_type<tc>, window_params = [{transform_indices = @transform_0, window_bounds = array<i64: 16, 128>}, {pipeline_mode = #tpu.pipeline_mode<synchronous>, transform_indices = @transform_1, window_bounds = array<i64: 128, 256>}, {pipeline_mode = #tpu.pipeline_mode<synchronous>, transform_indices = @transform_2, window_bounds = array<i64: 1, 256>}, {pipeline_mode = #tpu.pipeline_mode<synchronous>, transform_indices = @transform_3, window_bounds = array<i64: 128, 256>}, {pipeline_mode = #tpu.pipeline_mode<synchronous>, transform_indices = @transform_4, window_bounds = array<i64: 1, 256>}, {pipeline_mode = #tpu.pipeline_mode<synchronous>, transform_indices = @transform_5, window_bounds = array<i64: 128, 512>}, {pipeline_mode = #tpu.pipeline_mode<synchronous>, transform_indices = @transform_6, window_bounds = array<i64: 1, 512>}, {transform_indices = @transform_7, window_bounds = array<i64: 16, 512>}]} {
    %c0 = arith.constant 0 : index
    %c0_0 = arith.constant 0 : index
    %0 = vector.load %arg1[%c0, %c0_0] : memref<16x128xf32, #tpu.memory_space<vmem>>, vector<16x128xf32>
    %c0_1 = arith.constant 0 : index
    %c0_2 = arith.constant 0 : index
    %1 = vector.load %arg2[%c0_1, %c0_2] : memref<128x256xf32, #tpu.memory_space<vmem>>, vector<128x256xf32>
    %cst = arith.constant dense<0.000000e+00> : vector<16x256xf32>
    %2 = tpu.matmul %0, %1, %cst {dimension_numbers = #tpu.dot_dimension_numbers<[1], [0], [0], [1], [0, 0, 1, 1], [], []>} : vector<16x128xf32>, vector<128x256xf32>, vector<16x256xf32> -> vector<16x256xf32>
    %c0_3 = arith.constant 0 : index
    %c0_4 = arith.constant 0 : index
    %3 = vector.load %arg3[%c0_3, %c0_4] : memref<1x256xf32, #tpu.memory_space<vmem>>, vector<1x256xf32>
    %4 = vector.broadcast %3 : vector<1x256xf32> to vector<16x256xf32>
    %5 = arith.addf %2, %4 : vector<16x256xf32>
    %6 = vector.extract_strided_slice %5 {offsets = [0, 0], sizes = [16, 128], strides = [1, 1]} : vector<16x256xf32> to vector<16x128xf32>
    %7 = vector.extract_strided_slice %5 {offsets = [0, 128], sizes = [16, 128], strides = [1, 1]} : vector<16x256xf32> to vector<16x128xf32>
    %8 = arith.negf %7 : vector<16x128xf32>
    %9 = math.exp %8 : vector<16x128xf32>
    %cst_5 = arith.constant 1.000000e+00 : f32
    %10 = vector.broadcast %cst_5 : f32 to vector<16x128xf32>
    %11 = arith.addf %10, %9 : vector<16x128xf32>
    %12 = arith.divf %10, %11 : vector<16x128xf32>
    %13 = arith.mulf %6, %12 : vector<16x128xf32>
    %c0_6 = arith.constant 0 : index
    %c0_7 = arith.constant 0 : index
    %14 = vector.load %arg4[%c0_6, %c0_7] : memref<128x256xf32, #tpu.memory_space<vmem>>, vector<128x256xf32>
    %cst_8 = arith.constant dense<0.000000e+00> : vector<16x256xf32>
    %15 = tpu.matmul %13, %14, %cst_8 {dimension_numbers = #tpu.dot_dimension_numbers<[1], [0], [0], [1], [0, 0, 1, 1], [], []>} : vector<16x128xf32>, vector<128x256xf32>, vector<16x256xf32> -> vector<16x256xf32>
    %c0_9 = arith.constant 0 : index
    %c0_10 = arith.constant 0 : index
    %16 = vector.load %arg5[%c0_9, %c0_10] : memref<1x256xf32, #tpu.memory_space<vmem>>, vector<1x256xf32>
    %17 = vector.broadcast %16 : vector<1x256xf32> to vector<16x256xf32>
    %18 = arith.addf %15, %17 : vector<16x256xf32>
    %19 = vector.extract_strided_slice %18 {offsets = [0, 0], sizes = [16, 128], strides = [1, 1]} : vector<16x256xf32> to vector<16x128xf32>
    %20 = vector.extract_strided_slice %18 {offsets = [0, 128], sizes = [16, 128], strides = [1, 1]} : vector<16x256xf32> to vector<16x128xf32>
    %21 = arith.negf %20 : vector<16x128xf32>
    %22 = math.exp %21 : vector<16x128xf32>
    %cst_11 = arith.constant 1.000000e+00 : f32
    %23 = vector.broadcast %cst_11 : f32 to vector<16x128xf32>
    %24 = arith.addf %23, %22 : vector<16x128xf32>
    %25 = arith.divf %23, %24 : vector<16x128xf32>
    %26 = arith.mulf %19, %25 : vector<16x128xf32>
    %c0_12 = arith.constant 0 : index
    %c0_13 = arith.constant 0 : index
    %27 = vector.load %arg6[%c0_12, %c0_13] : memref<128x512xf32, #tpu.memory_space<vmem>>, vector<128x512xf32>
    %cst_14 = arith.constant dense<0.000000e+00> : vector<16x512xf32>
    %28 = tpu.matmul %26, %27, %cst_14 {dimension_numbers = #tpu.dot_dimension_numbers<[1], [0], [0], [1], [0, 0, 1, 1], [], []>} : vector<16x128xf32>, vector<128x512xf32>, vector<16x512xf32> -> vector<16x512xf32>
    %c0_15 = arith.constant 0 : index
    %c0_16 = arith.constant 0 : index
    %29 = vector.load %arg7[%c0_15, %c0_16] : memref<1x512xf32, #tpu.memory_space<vmem>>, vector<1x512xf32>
    %30 = vector.broadcast %29 : vector<1x512xf32> to vector<16x512xf32>
    %31 = arith.addf %28, %30 : vector<16x512xf32>
    %32 = vector.extract_strided_slice %31 {offsets = [0, 0], sizes = [16, 256], strides = [1, 1]} : vector<16x512xf32> to vector<16x256xf32>
    %c0_17 = arith.constant 0 : index
    %c0_18 = arith.constant 0 : index
    %33 = vector.load %arg8[%c0_17, %c0_18] : memref<16x512xf32, #tpu.memory_space<vmem>>, vector<16x256xf32>
    tpu.vector_store %arg8[%c0_17, %c0_18], %32 {strides = array<i32>} : memref<16x512xf32, #tpu.memory_space<vmem>>, vector<16x256xf32>,
    %34 = vector.extract_strided_slice %31 {offsets = [0, 256], sizes = [16, 256], strides = [1, 1]} : vector<16x512xf32> to vector<16x256xf32>
    %cst_19 = arith.constant -3.000000e+00 : f32
    %cst_20 = arith.constant 1.000000e+00 : f32
    %35 = vector.broadcast %cst_19 : f32 to vector<16x256xf32>
    %36 = arith.maximumf %35, %34 : vector<16x256xf32>
    %37 = vector.broadcast %cst_20 : f32 to vector<16x256xf32>
    %38 = arith.minimumf %37, %36 : vector<16x256xf32>
    %39 = math.exp %38 : vector<16x256xf32>
    %c0_21 = arith.constant 0 : index
    %c256 = arith.constant 256 : index
    %40 = vector.load %arg8[%c0_21, %c256] : memref<16x512xf32, #tpu.memory_space<vmem>>, vector<16x256xf32>
    tpu.vector_store %arg8[%c0_21, %c256], %39 {strides = array<i32>} : memref<16x512xf32, #tpu.memory_space<vmem>>, vector<16x256xf32>,
    return
  }
  func.func @transform_0(%arg0: i32) -> (i32, i32) {
    %c0_i32 = arith.constant 0 : i32
    %c0_i32_0 = arith.constant 0 : i32
    return %arg0, %c0_i32 : i32, i32
  }
  func.func @transform_1(%arg0: i32) -> (i32, i32) {
    %c0_i32 = arith.constant 0 : i32
    %c0_i32_0 = arith.constant 0 : i32
    %c0_i32_1 = arith.constant 0 : i32
    return %c0_i32, %c0_i32_0 : i32, i32
  }
  func.func @transform_2(%arg0: i32) -> (i32, i32) {
    %c0_i32 = arith.constant 0 : i32
    %c0_i32_0 = arith.constant 0 : i32
    %c0_i32_1 = arith.constant 0 : i32
    return %c0_i32, %c0_i32_0 : i32, i32
  }
  func.func @transform_3(%arg0: i32) -> (i32, i32) {
    %c0_i32 = arith.constant 0 : i32
    %c0_i32_0 = arith.constant 0 : i32
    %c0_i32_1 = arith.constant 0 : i32
    return %c0_i32, %c0_i32_0 : i32, i32
  }
  func.func @transform_4(%arg0: i32) -> (i32, i32) {
    %c0_i32 = arith.constant 0 : i32
    %c0_i32_0 = arith.constant 0 : i32
    %c0_i32_1 = arith.constant 0 : i32
    return %c0_i32, %c0_i32_0 : i32, i32
  }
  func.func @transform_5(%arg0: i32) -> (i32, i32) {
    %c0_i32 = arith.constant 0 : i32
    %c0_i32_0 = arith.constant 0 : i32
    %c0_i32_1 = arith.constant 0 : i32
    return %c0_i32, %c0_i32_0 : i32, i32
  }
  func.func @transform_6(%arg0: i32) -> (i32, i32) {
    %c0_i32 = arith.constant 0 : i32
    %c0_i32_0 = arith.constant 0 : i32
    %c0_i32_1 = arith.constant 0 : i32
    return %c0_i32, %c0_i32_0 : i32, i32
  }
  func.func @transform_7(%arg0: i32) -> (i32, i32) {
    %c0_i32 = arith.constant 0 : i32
    %c0_i32_0 = arith.constant 0 : i32
    return %arg0, %c0_i32 : i32, i32
  }
}

</mosaic_0001>

<bundles_post_ra>
// kernel: two_layer_gauss_decoder.1
= control target key start
LH: loop header
LB: loop body
LE: loop exit
PB: predicated region body
PF: predicated region fallthrough
CT: control target
= control target key end

     0   :  { %12 = vsyncpa [#allocation3], 0  ;;  %s829_s0 = inlined_call_operand.vmem [shape: f32[16,128], index: 0, kind: input, shape index: {}]   ;;  %s830_s1 = inlined_call_operand.hbm [shape: f32[128,256], index: 1, kind: input, shape index: {}]   ;;  %s831_s2 = inlined_call_operand.vmem [shape: f32[1,256], index: 2, kind: input, shape index: {}]   ;;  %s832_s3 = inlined_call_operand.hbm [shape: f32[128,256], index: 3, kind: input, shape index: {}]   ;;  %s833_s4 = inlined_call_operand.vmem [shape: f32[1,256], index: 4, kind: input, shape index: {}]   ;;  %s834_s5 = inlined_call_operand.hbm [shape: f32[128,512], index: 5, kind: input, shape index: {}]   ;;  %s835_s6 = inlined_call_operand.vmem [shape: f32[1,512], index: 6, kind: input, shape index: {}]   ;;  %s836_s7 = inlined_call_operand.vmem [shape: f32[16,512], index: 7, kind: output, shape index: {}]  }
   0x1   :  { %13 = vsyncpa [#allocation5], 0  ;;  %s709_s24 = smov [#allocation4]   ;;  %s710_s26 = smov [#allocation2]  }
   0x2   :  { %s35_s25 = sshll.u32 %s709_s24, 4  ;;  %s21_s27 = sshll.u32 %s710_s26, 4  ;;  %s36_s25 = int_to_ptr.vmem [resolvable:$true] %s35_s25  ;;  %s22_s27 = int_to_ptr.vmem [resolvable:$true] %s21_s27 }
   0x3   :  { %s653_s28 = scalar_lea.vmem %s36_s25, 4096  ;;  %p658_p1 = scmp.lt.s32.totalorder %s36_s25, %s36_s25 }
   0x4   :  { %p654_p0 = scmp.ne.s32.totalorder %s36_s25, %s653_s28  ;;  %p659_p2 = scmp.lt.s32.totalorder %s653_s28, %s653_s28 }
   0x6   :  { %p660_p3 = por %p659_p2, %p658_p1 }
   0x8   :  { %p661_p4 = pnand %p660_p3, %p654_p0 }
   0xa   :  { %664 = shalt.err (!%p661_p4)
}
   0xb   :  { %s711_s29 = smov 256   ;;  %s712_s30 = smov 16  }
   0xc   :  { %41 = dma.hbm_to_vmem [thread:$0]  %s832_s3, 4096, %s36_s25, [#allocation5], %s711_s29, %s711_s29, %s712_s30  }
   0xd   :  { %s673_s10 = scalar_lea.vmem %s22_s27, 4096  ;;  %p678_p6 = scmp.lt.s32.totalorder %s22_s27, %s22_s27 }
   0xe   :  { %p674_p5 = scmp.ne.s32.totalorder %s22_s27, %s673_s10  ;;  %p679_p7 = scmp.lt.s32.totalorder %s673_s10, %s673_s10 }
  0x10   :  { %p680_p8 = por %p679_p7, %p678_p6 }
  0x12   :  { %p681_p9 = pnand %p680_p8, %p674_p5 }
  0x14   :  { %684 = shalt.err (!%p681_p9)
}
  0x15   :  { %27 = dma.hbm_to_vmem [thread:$0]  %s830_s1, 4096, %s22_s27, [#allocation3], %s711_s29, %s711_s29, %s712_s30  }
  0x16   :  { %s713_s13 = smov [#allocation6]  }
  0x17   :  { %s49_s14 = sshll.u32 %s713_s13, 4  ;;  %s50_s14 = int_to_ptr.vmem [resolvable:$true] %s49_s14 }
  0x18   :  { %s693_s15 = scalar_lea.vmem %s50_s14, 8192  ;;  %p698_p11 = scmp.lt.s32.totalorder %s50_s14, %s50_s14 }
  0x19   :  { %p694_p10 = scmp.ne.s32.totalorder %s50_s14, %s693_s15  ;;  %p699_p12 = scmp.lt.s32.totalorder %s693_s15, %s693_s15 }
  0x1b   :  { %p700_p13 = por %p699_p12, %p698_p11 }
  0x1d   :  { %p701_p0 = pnand %p700_p13, %p694_p10 }
  0x1f   :  { %704 = shalt.err (!%p701_p0)
}
  0x20   :  { %s714_s3 = smov 512   ;;  %s715_s16 = smov 32  }
  0x21   :  { %55 = dma.hbm_to_vmem [thread:$0]  %s834_s5, 8192, %s50_s14, [#allocation5], %s714_s3, %s714_s3, %s715_s16  }
  0x22   :  { %705 = dma.done.wait [#allocation3], 4096  }
  0x23   :  { %706 = vsyncadd [#allocation3], 4294963200 }
  0x24   :  { %707 = dma.done.wait [#allocation5], 12288  }
  0x25   :  { %708 = vsyncadd [#allocation5], 4294955008  ;;  %v716_v0 = vmov 0.0   ;;  %v100_v1 = vld [vmem:[#allocation2 + $0xf8] sm:$0xff]  ;;  %v99_v2 = vld [vmem:[#allocation2 + $0xf0] sm:$0xff] }
  0x26   :  { %177 = vmatprep.mubr.f32.mxu0 %v716_v0  ;;  %312 = vmatprep.mubr.f32.mxu1 %v716_v0  ;;  %v98_v3 = vld [vmem:[#allocation2 + $0xe8] sm:$0xff]  ;;  %v97_v4 = vld [vmem:[#allocation2 + $0xe0] sm:$0xff]  ;;  %v96_v5 = vld [vmem:[#allocation2 + $0xd8] sm:$0xff] }
  0x27   :  { %113 = vmatprep.subr.mxu0 %v100_v1  ;;  %v95_v6 = vld [vmem:[#allocation2 + $0xd0] sm:$0xff]  ;;  %v94_v7 = vld [vmem:[#allocation2 + $0xc8] sm:$0xff]  ;;  %v93_v8 = vld [vmem:[#allocation2 + $0xc0] sm:$0xff] }
  0x28   :  { %114 = vmatpush1.msra.mxu0 %v99_v2  ;;  %v92_v9 = vld [vmem:[#allocation2 + $0xb8] sm:$0xff]  ;;  %v91_v10 = vld [vmem:[#allocation2 + $0xb0] sm:$0xff]  ;;  %v90_v11 = vld [vmem:[#allocation2 + $0xa8] sm:$0xff] }
  0x29   :  { %115 = vmatprep.subr.mxu0 %v98_v3  ;;  %v89_v12 = vld [vmem:[#allocation2 + $0xa0] sm:$0xff]  ;;  %v88_v13 = vld [vmem:[#allocation2 + $0x98] sm:$0xff]  ;;  %v87_v14 = vld [vmem:[#allocation2 + $0x90] sm:$0xff] }
  0x2a   :  { %116 = vmatpush1.msra.mxu0 %v97_v4  ;;  %v86_v15 = vld [vmem:[#allocation2 + $0x88] sm:$0xff]  ;;  %v85_v16 = vld [vmem:[#allocation2 + $0x80] sm:$0xff]  ;;  %v84_v17 = vld [vmem:[#allocation2 + $0x78] sm:$0xff]  ;;  %v103_v4 = vlaneseq }
  0x2b   :  { %117 = vmatprep.subr.mxu0 %v96_v5  ;;  %v83_v18 = vld [vmem:[#allocation2 + $0x70] sm:$0xff]  ;;  %v82_v19 = vld [vmem:[#allocation2 + $0x68] sm:$0xff]  ;;  %v81_v20 = vld [vmem:[#allocation2 + $0x60] sm:$0xff] }
  0x2c   :  { %118 = vmatpush1.msra.mxu0 %v95_v6  ;;  %v80_v21 = vld [vmem:[#allocation2 + $0x58] sm:$0xff]  ;;  %v79_v22 = vld [vmem:[#allocation2 + $0x50] sm:$0xff]  ;;  %v78_v23 = vld [vmem:[#allocation2 + $0x48] sm:$0xff]  ;;  %v776_v5 = vshrl.u32 %v103_v4, 7 }
  0x2d   :  { %119 = vmatprep.subr.mxu0 %v94_v7  ;;  %v77_v24 = vld [vmem:[#allocation2 + $0x40] sm:$0xff]  ;;  %v76_v25 = vld [vmem:[#allocation2 + $0x38] sm:$0xff]  ;;  %v75_v26 = vld [vmem:[#allocation2 + $0x30] sm:$0xff] }
  0x2e   :  { %120 = vmatpush1.msra.mxu0 %v93_v8  ;;  %v74_v27 = vld [vmem:[#allocation2 + $0x28] sm:$0xff]  ;;  %v73_v28 = vld [vmem:[#allocation2 + $0x20] sm:$0xff]  ;;  %v72_v29 = vld [vmem:[#allocation2 + $0x18] sm:$0xff]  ;;  %v779_v6 = vsub.s32 1, %v776_v5 }
  0x2f   :  { %121 = vmatprep.subr.mxu0 %v92_v9  ;;  %v71_v30 = vld [vmem:[#allocation2 + $0x10] sm:$0xff]  ;;  %v70_v31 = vld [vmem:[#allocation2 + $0x8] sm:$0xff]  ;;  %v69_v32 = vld [vmem:[#allocation2] sm:$0xff] }
  0x30   :  { %122 = vmatpush1.msra.mxu0 %v91_v10  ;;  %v67_v33 = vld [vmem:[%s829_s0] sm:$0xff]  ;;  %v68_v34 = vld [vmem:[%s829_s0 + $0x8] sm:$0xff]  ;;  %v235_v35 = vld [vmem:[#allocation4 + $0xf8] sm:$0xff] }
  0x31   :  { %123 = vmatprep.subr.mxu0 %v90_v11  ;;  %248 = vmatprep.subr.mxu1 %v235_v35  ;;  %v234_v36 = vld [vmem:[#allocation4 + $0xf0] sm:$0xff]  ;;  %v233_v37 = vld [vmem:[#allocation4 + $0xe8] sm:$0xff]  ;;  %v232_v38 = vld [vmem:[#allocation4 + $0xe0] sm:$0xff] }
  0x32   :  { %124 = vmatpush1.msra.mxu0 %v89_v12  ;;  %249 = vmatpush1.msra.mxu1 %v234_v36  ;;  %v231_v39 = vld [vmem:[#allocation4 + $0xd8] sm:$0xff]  ;;  %v230_v40 = vld [vmem:[#allocation4 + $0xd0] sm:$0xff]  ;;  %v229_v41 = vld [vmem:[#allocation4 + $0xc8] sm:$0xff] }
  0x33   :  { %125 = vmatprep.subr.mxu0 %v88_v13  ;;  %250 = vmatprep.subr.mxu1 %v233_v37  ;;  %v228_v42 = vld [vmem:[#allocation4 + $0xc0] sm:$0xff]  ;;  %v227_v43 = vld [vmem:[#allocation4 + $0xb8] sm:$0xff]  ;;  %v226_v44 = vld [vmem:[#allocation4 + $0xb0] sm:$0xff] }
  0x34   :  { %126 = vmatpush1.msra.mxu0 %v87_v14  ;;  %251 = vmatpush1.msra.mxu1 %v232_v38  ;;  %v225_v45 = vld [vmem:[#allocation4 + $0xa8] sm:$0xff]  ;;  %v224_v46 = vld [vmem:[#allocation4 + $0xa0] sm:$0xff]  ;;  %v223_v47 = vld [vmem:[#allocation4 + $0x98] sm:$0xff] }
  0x35   :  { %127 = vmatprep.subr.mxu0 %v86_v15  ;;  %252 = vmatprep.subr.mxu1 %v231_v39  ;;  %v222_v48 = vld [vmem:[#allocation4 + $0x90] sm:$0xff]  ;;  %v221_v49 = vld [vmem:[#allocation4 + $0x88] sm:$0xff]  ;;  %v220_v50 = vld [vmem:[#allocation4 + $0x80] sm:$0xff] }
  0x36   :  { %128 = vmatpush1.msra.mxu0 %v85_v16  ;;  %253 = vmatpush1.msra.mxu1 %v230_v40  ;;  %v219_v51 = vld [vmem:[#allocation4 + $0x78] sm:$0xff]  ;;  %v218_v52 = vld [vmem:[#allocation4 + $0x70] sm:$0xff]  ;;  %v217_v53 = vld [vmem:[#allocation4 + $0x68] sm:$0xff] }
  0x37   :  { %129 = vmatprep.subr.mxu0 %v84_v17  ;;  %254 = vmatprep.subr.mxu1 %v229_v41  ;;  %v216_v54 = vld [vmem:[#allocation4 + $0x60] sm:$0xff]  ;;  %v215_v55 = vld [vmem:[#allocation4 + $0x58] sm:$0xff]  ;;  %v214_v56 = vld [vmem:[#allocation4 + $0x50] sm:$0xff] }
  0x38   :  { %130 = vmatpush1.msra.mxu0 %v83_v18  ;;  %255 = vmatpush1.msra.mxu1 %v228_v42  ;;  %v213_v57 = vld [vmem:[#allocation4 + $0x48] sm:$0xff]  ;;  %v212_v58 = vld [vmem:[#allocation4 + $0x40] sm:$0xff]  ;;  %v211_v59 = vld [vmem:[#allocation4 + $0x38] sm:$0xff] }
  0x39   :  { %131 = vmatprep.subr.mxu0 %v82_v19  ;;  %256 = vmatprep.subr.mxu1 %v227_v43  ;;  %v210_v60 = vld [vmem:[#allocation4 + $0x30] sm:$0xff]  ;;  %v209_v61 = vld [vmem:[#allocation4 + $0x28] sm:$0xff]  ;;  %v208_v62 = vld [vmem:[#allocation4 + $0x20] sm:$0xff] }
  0x3a   :  { %132 = vmatpush1.msra.mxu0 %v81_v20  ;;  %257 = vmatpush1.msra.mxu1 %v226_v44  ;;  %v207_v63 = vld [vmem:[#allocation4 + $0x18] sm:$0xff]  ;;  %v206_v1 = vld [vmem:[#allocation4 + $0x10] sm:$0xff]  ;;  %v205_v2 = vld [vmem:[#allocation4 + $0x8] sm:$0xff] }
  0x3b   :  { %133 = vmatprep.subr.mxu0 %v80_v21  ;;  %258 = vmatprep.subr.mxu1 %v225_v45  ;;  %v204_v3 = vld [vmem:[#allocation4] sm:$0xff]  ;;  %v786_v21 = vsub.s32 0, %v776_v5  ;;  %v397_v36 = vld [vmem:[#allocation6 + $0x1d0] sm:$0xff]  ;;  %v392_v37 = vld [vmem:[#allocation6 + $0x1a8] sm:$0xff] }
  0x3c   :  { %134 = vmatpush1.msra.mxu0 %v79_v22  ;;  %259 = vmatpush1.msra.mxu1 %v224_v46  ;;  %v101_v7 = vld [vmem:[%s831_s2] sm:$0x3]  ;;  %v394_v38 = vld [vmem:[#allocation6 + $0x1b8] sm:$0xff]  ;;  %v393_v40 = vld [vmem:[#allocation6 + $0x1b0] sm:$0xff] }
  0x3d   :  { %135 = vmatprep.subr.mxu0 %v78_v23  ;;  %260 = vmatprep.subr.mxu1 %v223_v47  ;;  %v110_v8 = vrot.slane %v101_v7, %v779_v6  ;;  %v106_v22 = vrot.slane %v101_v7, %v786_v21  ;;  %v395_v35 = vld [vmem:[#allocation6 + $0x1c0] sm:$0xff]  ;;  %v388_v41 = vld [vmem:[#allocation6 + $0x188] sm:$0xff]  ;;  %v390_v42 = vld [vmem:[#allocation6 + $0x198] sm:$0xff] }
  0x3e   :  { %136 = vmatpush1.msra.mxu0 %v77_v24  ;;  %261 = vmatpush1.msra.mxu1 %v222_v48  ;;  %v391_v39 = vld [vmem:[#allocation6 + $0x1a0] sm:$0xff]  ;;  %v389_v44 = vld [vmem:[#allocation6 + $0x190] sm:$0xff]  ;;  %v384_v45 = vld [vmem:[#allocation6 + $0x168] sm:$0xff] }
  0x3f   :  { %137 = vmatprep.subr.mxu0 %v76_v25  ;;  %262 = vmatprep.subr.mxu1 %v221_v49  ;;  %v387_v43 = vld [vmem:[#allocation6 + $0x180] sm:$0xff]  ;;  %v386_v46 = vld [vmem:[#allocation6 + $0x178] sm:$0xff]  ;;  %v385_v48 = vld [vmem:[#allocation6 + $0x170] sm:$0xff] }
  0x40   :  { %138 = vmatpush1.msra.mxu0 %v75_v26  ;;  %263 = vmatpush1.msra.mxu1 %v220_v50  ;;  %v383_v47 = vld [vmem:[#allocation6 + $0x160] sm:$0xff]  ;;  %v380_v49 = vld [vmem:[#allocation6 + $0x148] sm:$0xff]  ;;  %v382_v50 = vld [vmem:[#allocation6 + $0x158] sm:$0xff] }
  0x41   :  { %139 = vmatprep.subr.mxu0 %v74_v27  ;;  %264 = vmatprep.subr.mxu1 %v219_v51  ;;  %v379_v51 = vld [vmem:[#allocation6 + $0x140] sm:$0xff]  ;;  %v365_v7 = vld [vmem:[#allocation6 + $0xd0] sm:$0xff] }
  0x42   :  { %140 = vmatpush1.msra.mxu0 %v73_v28  ;;  %265 = vmatpush1.msra.mxu1 %v218_v52  ;;  %v381_v52 = vld [vmem:[#allocation6 + $0x150] sm:$0xff]  ;;  %v363_v4 = vld [vmem:[#allocation6 + $0xc0] sm:$0xff] }
  0x43   :  { %141 = vmatprep.subr.mxu0 %v72_v29  ;;  %266 = vmatprep.subr.mxu1 %v217_v53  ;;  %v400_v29 = vld [vmem:[#allocation6 + $0x1e8] sm:$0xff] }
  0x44   :  { %142 = vmatpush1.msra.mxu0 %v71_v30  ;;  %267 = vmatpush1.msra.mxu1 %v216_v54  ;;  %v402_v30 = vld [vmem:[#allocation6 + $0x1f8] sm:$0xff]  ;;  %v376_v53 = vld [vmem:[#allocation6 + $0x128] sm:$0xff] }
  0x45   :  { %143 = vmatprep.subr.mxu0 %v70_v31  ;;  %268 = vmatprep.subr.mxu1 %v215_v55  ;;  %v399_v31 = vld [vmem:[#allocation6 + $0x1e0] sm:$0xff]  ;;  %v378_v54 = vld [vmem:[#allocation6 + $0x138] sm:$0xff] }
  0x46   :  { %144 = vmatpush1.msra.mxu0 %v69_v32  ;;  %269 = vmatpush1.msra.mxu1 %v214_v56  ;;  %v401_v32 = vld [vmem:[#allocation6 + $0x1f0] sm:$0xff]  ;;  %v375_v55 = vld [vmem:[#allocation6 + $0x120] sm:$0xff] }
  0x47   :  { %178 = vmatmul.mubr.f32.vlgmr.msra.gmra.mxu0 %v67_v33  ;;  %270 = vmatprep.subr.mxu1 %v213_v57  ;;  %v396_v33 = vld [vmem:[#allocation6 + $0x1c8] sm:$0xff]  ;;  %v377_v56 = vld [vmem:[#allocation6 + $0x130] sm:$0xff] }
  0x48   :  { %183 = vmatprep.mubr.f32.mxu0 %v716_v0  ;;  %271 = vmatpush1.msra.mxu1 %v212_v58  ;;  %v372_v57 = vld [vmem:[#allocation6 + $0x108] sm:$0xff]  ;;  %v374_v58 = vld [vmem:[#allocation6 + $0x118] sm:$0xff] }
  0x49   :  { %272 = vmatprep.subr.mxu1 %v211_v59  ;;  %425 = vmatprep.subr.mxu0 %v400_v29  ;;  %v371_v59 = vld [vmem:[#allocation6 + $0x100] sm:$0xff]  ;;  %v340_v29 = vld [vmem:[#allocation6 + $0x8] sm:$0xff] }
  0x4a   :  { %273 = vmatpush1.msra.mxu1 %v210_v60  ;;  %426 = vmatpush1.msra.mxu0 %v399_v31  ;;  %v373_v60 = vld [vmem:[#allocation6 + $0x110] sm:$0xff]  ;;  %v339_v31 = vld [vmem:[#allocation6] sm:$0xff] }
  0x4b   :  { %184 = vmatmul.mubr.f32.gmra.mxu0 %v68_v34  ;;  %274 = vmatprep.subr.mxu1 %v209_v61  ;;  %v398_v34 = vld [vmem:[#allocation6 + $0x1d8] sm:$0xff]  ;;  %v368_v61 = vld [vmem:[#allocation6 + $0xe8] sm:$0xff] }
  0x4c   :  { %489 = vmatprep.mubr.f32.mxu0 %v716_v0  ;;  %275 = vmatpush1.msra.mxu1 %v208_v62  ;;  %v370_v62 = vld [vmem:[#allocation6 + $0xf8] sm:$0xff] }
  0x4d   :  { %276 = vmatprep.subr.mxu1 %v207_v63  ;;  %427 = vmatprep.subr.mxu0 %v396_v33  ;;  %v367_v63 = vld [vmem:[#allocation6 + $0xe0] sm:$0xff] }
  0x4e   :  { %277 = vmatpush1.msra.mxu1 %v206_v1  ;;  %428 = vmatpush1.msra.mxu0 %v395_v35  ;;  %v369_v1 = vld [vmem:[#allocation6 + $0xf0] sm:$0xff]  ;;  %v236_v33 = vld [vmem:[%s833_s4] sm:$0x3] }
  0x4f   :  { %278 = vmatprep.subr.mxu1 %v205_v2  ;;  %429 = vmatprep.subr.mxu0 %v392_v37  ;;  %v364_v2 = vld [vmem:[#allocation6 + $0xc8] sm:$0xff] }
  0x50   :  { %279 = vmatpush1.msra.mxu1 %v204_v3  ;;  %430 = vmatpush1.msra.mxu0 %v391_v39  ;;  %v366_v3 = vld [vmem:[#allocation6 + $0xd8] sm:$0xff] }
  0x51   :  { %502 = vmatprep.subr.mxu1 %v402_v30  ;;  %431 = vmatprep.subr.mxu0 %v388_v41  ;;  %v342_v30 = vld [vmem:[#allocation6 + $0x18] sm:$0xff] }
  0x52   :  { %432 = vmatpush1.msra.mxu0 %v387_v43 }
  0x53   :  { %433 = vmatprep.subr.mxu0 %v384_v45 }
  0x54   :  { %434 = vmatpush1.msra.mxu0 %v383_v47  ;;  %v241_v47 = vrot.slane %v236_v33, %v786_v21 }
  0x55   :  { %435 = vmatprep.subr.mxu0 %v380_v49 }
  0x56   :  { %436 = vmatpush1.msra.mxu0 %v379_v51 }
  0x57   :  { %437 = vmatprep.subr.mxu0 %v376_v53 }
  0x58   :  { %438 = vmatpush1.msra.mxu0 %v375_v55  ;;  %v403_v55 = vld [vmem:[%s835_s6] sm:$0xf] }
  0x59   :  { %439 = vmatprep.subr.mxu0 %v372_v57  ;;  %v408_v57 = vrot.slane %v403_v55, %v786_v21 }
  0x5a   :  { %440 = vmatpush1.msra.mxu0 %v371_v59  ;;  %v412_v59 = vrot.slane %v403_v55, %v779_v6 }
  0x5b   :  { %441 = vmatprep.subr.mxu0 %v368_v61 }
  0x5c   :  { %442 = vmatpush1.msra.mxu0 %v367_v63 }
  0x5d   :  { %443 = vmatprep.subr.mxu0 %v364_v2 }
  0x5e   :  { %444 = vmatpush1.msra.mxu0 %v363_v4 }
 0x107   :  { %v179_v9 = vpop.f32.mrf.mxu0 }
 0x108   :  { %v180_v23 = vadd.f32 %v179_v9, %v106_v22  ;;  %v362_v9 = vld [vmem:[#allocation6 + $0xb8] sm:$0xff] }
 0x109   :  { %v181_v10 = vpop.f32.mrf.mxu0 }
 0x10a   :  { %v182_v11 = vadd.f32 %v181_v10, %v110_v8  ;;  %v359_v10 = vld [vmem:[#allocation6 + $0xa0] sm:$0xff] }
 0x10b   :  { %v185_v12 = vpop.f32.mrf.mxu0 }
 0x10c   :  { %v609_v13 = vmul.f32 -1.442695, %v182_v11  ;;  %v186_v26 = vadd.f32 %v185_v12, %v106_v22  ;;  %v361_v11 = vld [vmem:[#allocation6 + $0xb0] sm:$0xff]  ;;  %v356_v12 = vld [vmem:[#allocation6 + $0x88] sm:$0xff]  ;;  %v350_v22 = vld [vmem:[#allocation6 + $0x58] sm:$0xff] }
 0x10d   :  { %v187_v14 = vpop.f32.mrf.mxu0 }
 0x10e   :  { %621 = vpow2.f32 %v609_v13  ;;  %v188_v15 = vadd.f32 %v187_v14, %v110_v8  ;;  %v360_v8 = vld [vmem:[#allocation6 + $0xa8] sm:$0xff]  ;;  %v358_v13 = vld [vmem:[#allocation6 + $0x98] sm:$0xff]  ;;  %v355_v14 = vld [vmem:[#allocation6 + $0x80] sm:$0xff] }
 0x10f   :  { %445 = vmatprep.subr.mxu0 %v360_v8 }
 0x110   :  { %v610_v16 = vmul.f32 -1.442695, %v188_v15  ;;  %446 = vmatpush1.msra.mxu0 %v359_v10  ;;  %v357_v15 = vld [vmem:[#allocation6 + $0x90] sm:$0xff] }
 0x111   :  { %447 = vmatprep.subr.mxu0 %v356_v12 }
 0x112   :  { %623 = vpow2.f32 %v610_v16  ;;  %v352_v16 = vld [vmem:[#allocation6 + $0x68] sm:$0xff]  ;;  %448 = vmatpush1.msra.mxu0 %v355_v14 }
 0x113   :  { %449 = vmatprep.subr.mxu0 %v352_v16 }
 0x11b   :  { %v622_v17 = vpop.eup %621 }
 0x11c   :  { %v196_v18 = vadd.f32 1.0, %v622_v17  ;;  %v354_v17 = vld [vmem:[#allocation6 + $0x78] sm:$0xff] }
 0x11e   :  { %625 = vrcp.f32 %v196_v18  ;;  %v351_v18 = vld [vmem:[#allocation6 + $0x60] sm:$0xff] }
 0x11f   :  { %v624_v19 = vpop.eup %623  ;;  %450 = vmatpush1.msra.mxu0 %v351_v18 }
 0x120   :  { %v197_v20 = vadd.f32 1.0, %v624_v19  ;;  %v353_v19 = vld [vmem:[#allocation6 + $0x70] sm:$0xff] }
 0x122   :  { %627 = vrcp.f32 %v197_v20  ;;  %v348_v20 = vld [vmem:[#allocation6 + $0x48] sm:$0xff] }
 0x123   :  { %451 = vmatprep.subr.mxu0 %v348_v20 }
 0x12b   :  { %v626_v24 = vpop.eup %625 }
 0x12c   :  { %v202_v25 = vmul.f32 %v626_v24, %v180_v23  ;;  %v347_v23 = vld [vmem:[#allocation6 + $0x40] sm:$0xff]  ;;  %v349_v24 = vld [vmem:[#allocation6 + $0x50] sm:$0xff] }
 0x12d   :  { %452 = vmatpush1.msra.mxu0 %v347_v23 }
 0x12e   :  { %313 = vmatmul.mubr.f32.vlgmr.msra.gmra.mxu1 %v202_v25  ;;  %v344_v25 = vld [vmem:[#allocation6 + $0x28] sm:$0xff] }
 0x12f   :  { %v628_v27 = vpop.eup %627  ;;  %318 = vmatprep.mubr.f32.mxu1 %v716_v0  ;;  %503 = vmatpush1.msra.mxu1 %v401_v32  ;;  %v341_v32 = vld [vmem:[#allocation6 + $0x10] sm:$0xff] }
 0x130   :  { %v203_v28 = vmul.f32 %v628_v27, %v186_v26  ;;  %504 = vmatprep.subr.mxu1 %v398_v34  ;;  %v346_v26 = vld [vmem:[#allocation6 + $0x38] sm:$0xff]  ;;  %v343_v27 = vld [vmem:[#allocation6 + $0x20] sm:$0xff]  ;;  %453 = vmatprep.subr.mxu0 %v344_v25  ;;  %v245_v34 = vrot.slane %v236_v33, %v779_v6 }
 0x131   :  { %505 = vmatpush1.msra.mxu1 %v397_v36  ;;  %454 = vmatpush1.msra.mxu0 %v343_v27 }
 0x132   :  { %319 = vmatmul.mubr.f32.gmra.mxu1 %v203_v28  ;;  %506 = vmatprep.subr.mxu1 %v394_v38  ;;  %v345_v28 = vld [vmem:[#allocation6 + $0x30] sm:$0xff] }
 0x133   :  { %566 = vmatprep.mubr.f32.mxu1 %v716_v0  ;;  %507 = vmatpush1.msra.mxu1 %v393_v40 }
 0x134   :  { %508 = vmatprep.subr.mxu1 %v390_v42  ;;  %455 = vmatprep.subr.mxu0 %v340_v29 }
 0x135   :  { %509 = vmatpush1.msra.mxu1 %v389_v44  ;;  %456 = vmatpush1.msra.mxu0 %v339_v31 }
 0x136   :  { %510 = vmatprep.subr.mxu1 %v386_v46 }
 0x137   :  { %511 = vmatpush1.msra.mxu1 %v385_v48 }
 0x138   :  { %512 = vmatprep.subr.mxu1 %v382_v50 }
 0x139   :  { %513 = vmatpush1.msra.mxu1 %v381_v52 }
 0x13a   :  { %514 = vmatprep.subr.mxu1 %v378_v54  ;;  %v415_v54 = vsub.s32 2, %v776_v5 }
 0x13b   :  { %515 = vmatpush1.msra.mxu1 %v377_v56  ;;  %v419_v56 = vsub.s32 3, %v776_v5 }
 0x13c   :  { %516 = vmatprep.subr.mxu1 %v374_v58  ;;  %v416_v58 = vrot.slane %v403_v55, %v415_v54 }
 0x13d   :  { %517 = vmatpush1.msra.mxu1 %v373_v60  ;;  %v420_v60 = vrot.slane %v403_v55, %v419_v56 }
 0x13e   :  { %518 = vmatprep.subr.mxu1 %v370_v62 }
 0x13f   :  { %519 = vmatpush1.msra.mxu1 %v369_v1 }
 0x140   :  { %520 = vmatprep.subr.mxu1 %v366_v3 }
 0x141   :  { %521 = vmatpush1.msra.mxu1 %v365_v7 }
 0x142   :  { %522 = vmatprep.subr.mxu1 %v362_v9 }
 0x143   :  { %523 = vmatpush1.msra.mxu1 %v361_v11 }
 0x144   :  { %524 = vmatprep.subr.mxu1 %v358_v13 }
 0x145   :  { %525 = vmatpush1.msra.mxu1 %v357_v15 }
 0x146   :  { %526 = vmatprep.subr.mxu1 %v354_v17 }
 0x147   :  { %527 = vmatpush1.msra.mxu1 %v353_v19 }
 0x148   :  { %528 = vmatprep.subr.mxu1 %v350_v22 }
 0x149   :  { %529 = vmatpush1.msra.mxu1 %v349_v24 }
 0x14a   :  { %530 = vmatprep.subr.mxu1 %v346_v26 }
 0x14b   :  { %531 = vmatpush1.msra.mxu1 %v345_v28 }
 0x14c   :  { %532 = vmatprep.subr.mxu1 %v342_v30 }
 0x14d   :  { %533 = vmatpush1.msra.mxu1 %v341_v32 }
 0x1ee   :  { %v314_v35 = vpop.f32.mrf.mxu1 }
 0x1ef   :  { %v315_v48 = vadd.f32 %v314_v35, %v241_v47 }
 0x1f0   :  { %v316_v36 = vpop.f32.mrf.mxu1 }
 0x1f1   :  { %v317_v37 = vadd.f32 %v316_v36, %v245_v34 }
 0x1f2   :  { %v320_v38 = vpop.f32.mrf.mxu1 }
 0x1f3   :  { %v611_v39 = vmul.f32 -1.442695, %v317_v37  ;;  %v321_v51 = vadd.f32 %v320_v38, %v241_v47 }
 0x1f4   :  { %v322_v40 = vpop.f32.mrf.mxu1 }
 0x1f5   :  { %629 = vpow2.f32 %v611_v39  ;;  %v323_v41 = vadd.f32 %v322_v40, %v245_v34 }
 0x1f7   :  { %v612_v42 = vmul.f32 -1.442695, %v323_v41 }
 0x1f9   :  { %631 = vpow2.f32 %v612_v42 }
 0x202   :  { %v630_v43 = vpop.eup %629 }
 0x203   :  { %v331_v44 = vadd.f32 1.0, %v630_v43 }
 0x205   :  { %633 = vrcp.f32 %v331_v44 }
 0x206   :  { %v632_v45 = vpop.eup %631 }
 0x207   :  { %v332_v46 = vadd.f32 1.0, %v632_v45 }
 0x209   :  { %635 = vrcp.f32 %v332_v46 }
 0x212   :  { %v634_v49 = vpop.eup %633 }
 0x213   :  { %v337_v50 = vmul.f32 %v634_v49, %v315_v48 }
 0x215   :  { %490 = vmatmul.mubr.f32.vlgmr.msra.gmra.mxu0 %v337_v50  ;;  %567 = vmatmul.mubr.f32.vlgmr.msra.gmra.mxu1 %v337_v50 }
 0x216   :  { %v636_v52 = vpop.eup %635  ;;  %495 = vmatprep.mubr.f32.mxu0 %v716_v0  ;;  %572 = vmatprep.mubr.f32.mxu1 %v716_v0 }
 0x217   :  { %v338_v53 = vmul.f32 %v636_v52, %v321_v51 }
 0x219   :  { %496 = vmatmul.mubr.f32.gmra.mxu0 %v338_v53  ;;  %573 = vmatmul.mubr.f32.gmra.mxu1 %v338_v53 }
 0x2d5   :  { %v491_v61 = vpop.f32.mrf.mxu0  ;;  %v568_v62 = vpop.f32.mrf.mxu1 }
 0x2d6   :  { %v492_v0 = vadd.f32 %v491_v61, %v408_v57  ;;  %v569_v63 = vadd.f32 %v568_v62, %v416_v58 }
 0x2d7   :  { %v493_v1 = vpop.f32.mrf.mxu0  ;;  %v570_v2 = vpop.f32.mrf.mxu1 }
 0x2d8   :  { %579 = vst [vmem:[%s836_s7] sm:$0xff] %v492_v0  ;;  %v583_v3 = vmax.f32 %v569_v63, -3.0  ;;  %v494_v4 = vadd.f32 %v493_v1, %v412_v59  ;;  %v571_v7 = vadd.f32 %v570_v2, %v420_v60 }
 0x2d9   :  { %v497_v5 = vpop.f32.mrf.mxu0  ;;  %v574_v8 = vpop.f32.mrf.mxu1 }
 0x2da   :  { %v587_v21 = vmin.f32 %v583_v3, 1.0  ;;  %580 = vst [vmem:[%s836_s7 + $0x8] sm:$0xff] %v494_v4  ;;  %v584_v6 = vmax.f32 %v571_v7, -3.0  ;;  %v498_v9 = vadd.f32 %v497_v5, %v408_v57  ;;  %v575_v10 = vadd.f32 %v574_v8, %v416_v58 }
 0x2db   :  { %v499_v11 = vpop.f32.mrf.mxu0  ;;  %v576_v12 = vpop.f32.mrf.mxu1 }
 0x2dc   :  { %v591_v13 = vmul.f32 1.442695, %v587_v21  ;;  %v588_v14 = vmin.f32 %v584_v6, 1.0  ;;  %581 = vst [vmem:[%s836_s7 + $0x20] sm:$0xff] %v498_v9  ;;  %v585_v15 = vmax.f32 %v575_v10, -3.0  ;;  %v500_v16 = vadd.f32 %v499_v11, %v412_v59 }
 0x2dd   :  { %v577_v17 = vadd.f32 %v576_v12, %v420_v60 }
 0x2de   :  { %637 = vpow2.f32 %v591_v13  ;;  %v593_v18 = vmul.f32 1.442695, %v588_v14  ;;  %v589_v19 = vmin.f32 %v585_v15, 1.0  ;;  %582 = vst [vmem:[%s836_s7 + $0x28] sm:$0xff] %v500_v16 }
 0x2df   :  { %v586_v20 = vmax.f32 %v577_v17, -3.0 }
 0x2e0   :  { %639 = vpow2.f32 %v593_v18  ;;  %v595_v22 = vmul.f32 1.442695, %v589_v19 }
 0x2e1   :  { %v590_v23 = vmin.f32 %v586_v20, 1.0 }
 0x2e2   :  { %641 = vpow2.f32 %v595_v22 }
 0x2e3   :  { %v597_v24 = vmul.f32 1.442695, %v590_v23 }
 0x2e5   :  { %643 = vpow2.f32 %v597_v24 }
 0x2eb   :  { %v638_v25 = vpop.eup %637 }
 0x2ec   :  { %599 = vst [vmem:[%s836_s7 + $0x10] sm:$0xff] %v638_v25 }
 0x2ed   :  { %v640_v26 = vpop.eup %639 }
 0x2ee   :  { %600 = vst [vmem:[%s836_s7 + $0x18] sm:$0xff] %v640_v26 }
 0x2ef   :  { %v642_v27 = vpop.eup %641 }
 0x2f0   :  { %601 = vst [vmem:[%s836_s7 + $0x30] sm:$0xff] %v642_v27 }
 0x2f2   :  { %v644_v28 = vpop.eup %643 }
 0x2f3   :  { %602 = vst [vmem:[%s836_s7 + $0x38] sm:$0xff] %v644_v28 }
 0x2f4   :  { %607 = vsyncpa [#allocation3], 1 }
 0x2f5   :  { %608 = vsyncpa [#allocation5], 1 }

</bundles_post_ra>
